<compile_context>
chip_gen: v7x
topology: tpu7x:2x2x1
jax: 0.10.0
libtpu: 0.0.40
codegen_flags: <defaults>
</compile_context>

<pallas_src>
import jax
import jax.numpy as jnp
from jax.experimental import pallas as pl
from jax.experimental.pallas import tpu as pltpu


# ------------------------------ Pallas kernel ------------------------------

def _scale_kernel(alpha_ref, x_ref, o_ref):
    # alpha_ref: (1,) float32 scalar in SMEM; x_ref / o_ref: (block_rows, 128)
    # VMEM tiles. Compute in f32, cast on store (no-op for f32 inputs).
    o_ref[...] = (x_ref[...] * alpha_ref[0]).astype(o_ref.dtype)


# ------------------------------ pallas_call wrapper ------------------------------

def _scale_2d(x2, alpha_f32, *, block_rows, donate_x=False):
    rows, lanes = x2.shape
    nbytes = x2.size * x2.dtype.itemsize
    extra = {}
    if donate_x:
        # Optional: reuse x2's HBM buffer for the output (caller must not need x).
        extra["input_output_aliases"] = {1: 0}
    return pl.pallas_call(
        _scale_kernel,
        out_shape=jax.ShapeDtypeStruct((rows, lanes), x2.dtype),
        grid=(pl.cdiv(rows, block_rows),),
        in_specs=[
            # alpha: whole (1,) f32 array resident in SMEM, read as a scalar.
            pl.BlockSpec(memory_space=pltpu.MemorySpace.SMEM),
            pl.BlockSpec((block_rows, lanes), lambda i: (i, 0)),
        ],
        out_specs=pl.BlockSpec((block_rows, lanes), lambda i: (i, 0)),
        compiler_params=pltpu.CompilerParams(
            dimension_semantics=("parallel",),
        ),
        cost_estimate=pl.CostEstimate(
            flops=x2.size, transcendentals=0, bytes_accessed=2 * nbytes),
        **extra,
    )(alpha_f32, x2)


def scale_block(x, alpha, *, max_block_rows=4096, lanes=128, donate_x=False):
    """ScaleBlock.forward: y = alpha * x, for an arbitrary-shaped tensor x."""
    orig_shape = x.shape
    n = x.size
    alpha_f32 = jnp.asarray(alpha, jnp.float32).reshape(1)

    rows = pl.cdiv(n, lanes)
    # Row tile: multiple of 8 (sublane quantum); large enough (default up to
    # 4096 rows = 2 MiB f32 per buffer, 8 MiB double-buffered in+out) to
    # amortize per-grid-step overhead while fitting v5e's 16 MiB scoped VMEM;
    # capped near rows/4 so small inputs still get >= ~4 grid steps for v7x
    # megacore sharding and pipelining overlap.
    target = max(1, -(-rows // 4))
    block_rows = max(8, min(max_block_rows, ((target + 7) // 8) * 8))

    if n == rows * lanes:
        # Fast path (n % 128 == 0): no pad, no output slice, free reshapes.
        x2 = x.reshape(rows, lanes)
        y2 = _scale_2d(x2, alpha_f32, block_rows=block_rows, donate_x=donate_x)
        return y2.reshape(orig_shape)

    # Slow path (n % 128 != 0): pad only to the 128-lane quantum (< 128 elems
    # of padding); the partial last row-block is handled by masked OOB writes.
    pad = rows * lanes - n
    xf = jnp.pad(jnp.ravel(x), (0, pad))
    x2 = xf.reshape(rows, lanes)
    y2 = _scale_2d(x2, alpha_f32, block_rows=block_rows, donate_x=donate_x)
    return y2.reshape(-1)[:n].reshape(orig_shape)


# ------------------------------ test / reference ------------------------------

if __name__ == "__main__":
    key = jax.random.PRNGKey(0)
    kx, ka, kz = jax.random.split(key, 3)

    # PyTorch-style NCHW input; ScaleBlock is shape-agnostic.
    x = jax.random.normal(kx, (2, 4, 16, 16), jnp.float32)
    alpha = jax.random.normal(ka, (1,), jnp.float32)   # nn.Parameter of shape (1,)

    y = jax.block_until_ready(jax.jit(scale_block)(x, alpha))
    ref = alpha * x
    assert y.shape == ref.shape, (y.shape, ref.shape)
    assert jnp.allclose(y, ref, rtol=1e-6, atol=1e-6), float(jnp.max(jnp.abs(y - ref)))

    # Exercise the non-128-divisible slow path once as well.
    z = jax.random.normal(kz, (3, 5, 7), jnp.float32)
    yz = jax.block_until_ready(jax.jit(scale_block)(z, alpha))
    refz = alpha * z
    assert yz.shape == refz.shape, (yz.shape, refz.shape)
    assert jnp.allclose(yz, refz, rtol=1e-6, atol=1e-6), float(jnp.max(jnp.abs(yz - refz)))

    print("KERNEL_OK")
</pallas_src>

<mosaic_0001>
module attributes {stable_mosaic.version = 11 : i64} {
  func.func @_scale_kernel(%arg0: i32, %arg1: memref<1xf32, #tpu.memory_space<smem>>, %arg2: memref<8x128xf32, #tpu.memory_space<vmem>>, %arg3: memref<8x128xf32, #tpu.memory_space<vmem>>) attributes {dimension_semantics = [#tpu.dimension_semantics<parallel>], iteration_bounds = array<i64: 2>, scalar_prefetch = 0 : i64, scratch_operands = 0 : i64, tpu.core_type = #tpu.core_type<tc>, window_params = [{transform_indices = @transform_0, window_bounds = array<i64: 1>}, {transform_indices = @transform_1, window_bounds = array<i64: 8, 128>}, {transform_indices = @transform_2, window_bounds = array<i64: 8, 128>}]} {
    %c0 = arith.constant 0 : index
    %c0_0 = arith.constant 0 : index
    %0 = vector.load %arg2[%c0, %c0_0] : memref<8x128xf32, #tpu.memory_space<vmem>>, vector<8x128xf32>
    %c0_1 = arith.constant 0 : index
    %1 = memref.load %arg1[%c0_1] : memref<1xf32, #tpu.memory_space<smem>>
    %2 = vector.broadcast %1 : f32 to vector<8x128xf32>
    %3 = arith.mulf %0, %2 : vector<8x128xf32>
    %c0_2 = arith.constant 0 : index
    %c0_3 = arith.constant 0 : index
    %4 = vector.load %arg3[%c0_2, %c0_3] : memref<8x128xf32, #tpu.memory_space<vmem>>, vector<8x128xf32>
    tpu.vector_store %arg3[%c0_2, %c0_3], %3 {strides = array<i32>} : memref<8x128xf32, #tpu.memory_space<vmem>>, vector<8x128xf32>,
    return
  }
  func.func @transform_0(%arg0: i32) -> i32 {
    %c0_i32 = arith.constant 0 : i32
    %c0_i32_0 = arith.constant 0 : i32
    return %c0_i32 : i32
  }
  func.func @transform_1(%arg0: i32) -> (i32, i32) {
    %c0_i32 = arith.constant 0 : i32
    %c0_i32_0 = arith.constant 0 : i32
    return %arg0, %c0_i32 : i32, i32
  }
  func.func @transform_2(%arg0: i32) -> (i32, i32) {
    %c0_i32 = arith.constant 0 : i32
    %c0_i32_0 = arith.constant 0 : i32
    return %arg0, %c0_i32 : i32, i32
  }
}

</mosaic_0001>

<bundles_post_ra>
// kernel: scale_block.1
= control target key start
LH: loop header
LB: loop body
LE: loop exit
PB: predicated region body
PF: predicated region fallthrough
CT: control target
= control target key end

     0   :  { %s219_s11 = smov 0   ;;  %s247_s0 = inlined_call_operand.<no memory space> [shape: f32[1], index: 0, kind: input, shape index: {}]   ;;  %s248_s1 = inlined_call_operand.vmem [shape: f32[16,128], index: 1, kind: input, shape index: {}]   ;;  %s249_s2 = inlined_call_operand.vmem [shape: f32[16,128], index: 2, kind: output, shape index: {}]  }
   0x1   :  { %7 = sst [smem:[#allocation2]] %s247_s0 }
   0x2 LB: > { %s198_s12 = sadd.s32 4294967295, %s221_s11   ;;  %p202_p0 = scmp.ge.s32.totalorder %s221_s11, 1  ;;  %s221_s11 = sphi %s219_s11, %s13_s11  }
   0x3   : > { %p112_p1 = scmp.lt.s32.totalorder %s221_s11, 3 }
   0x5   : > { %p113_p2 = pnand %p202_p0, %p112_p1 }
   0x6   : > { %p132_p3 = scmp.lt.s32.totalorder (!%p113_p2), %s198_s12, 1  ;;  %s141_s13 = sld [smem:[#allocation2]] (!%p113_p2) }
   0x7   : > { %116 = sbr.rel (%p113_p2) target bundleno = 21 (0x15), region = 28 }
   0xc   : > { %v142_v1 = vstv (!%p113_p2), %s141_s13 }
   0xe   : > { %s251_s12 = smov (!%p132_p3, %s198_s12), 1 }
   0xf   : > { %s203_s14 = sshll.u32 %s251_s12, 3 }
  0x10   : > { %s135_s17 = scalar_lea.vmem %s248_s1, %s203_s14  ;;  %s139_s0 = scalar_lea.vmem %s249_s2, %s203_s14 }
  0x11   : > { %v140_v0 = vld [vmem:[%s135_s17] sm:$0xff] }
  0x12   : > { %v143_v2 = vmul.f32 %v142_v1, %v140_v0 }
  0x14   : > { %144 = vst [vmem:[%s139_s0] sm:$0xff] %v143_v2 }
  0x15 PF: > { %s13_s11 = sadd.s32 1, %s221_s11  }
  0x16   : > { %p10_p4 = scmp.ge.s32.totalorder %s13_s11, 4  }
  0x18   :  { %12 = sbr.rel (!%p10_p4) target bundleno = 2 (0x2), region = 58 }

</bundles_post_ra>
